<compile_context>
chip_gen: v6e
topology: v6e:2x2x1
jax: 0.10.0
libtpu: 0.0.40
codegen_flags: <defaults>
</compile_context>

<pallas_src>
import jax
import jax.numpy as jnp
from jax.experimental import pallas as pl
from jax.experimental.pallas import tpu as pltpu

LANE = 128      # lane width (last dim)


def _round_up(n, m):
    return (n + m - 1) // m * m


# ---------------------------------------------------------------------------
# Kernel: one batch tile, all three layers fused in VMEM.
# ---------------------------------------------------------------------------
def decoder_kernel(x_ref, w1_ref, b1_ref, w2_ref, b2_ref, w3_ref, b3_ref, o_ref):
    x = x_ref[...]                                   # (TB, d_in), compute dtype

    # fc1 + ReLU  (f32 accumulate, f32 bias/activation, cast back for next MXU pass)
    h1 = jnp.dot(x, w1_ref[...], preferred_element_type=jnp.float32) + b1_ref[...]
    h1 = jnp.maximum(h1, 0.0).astype(x.dtype)

    # fc2 + ReLU
    h2 = jnp.dot(h1, w2_ref[...], preferred_element_type=jnp.float32) + b2_ref[...]
    h2 = jnp.maximum(h2, 0.0).astype(x.dtype)

    # fc3 + Sigmoid: exp on EUP, reciprocal on EUP (approx) -> VPU stays free.
    z = jnp.dot(h2, w3_ref[...], preferred_element_type=jnp.float32) + b3_ref[...]
    z = jnp.maximum(z, -30.0)                        # avoid exp overflow for very negative z
    o_ref[...] = pl.reciprocal(1.0 + jnp.exp(-z), approx=True).astype(o_ref.dtype)


# ---------------------------------------------------------------------------
# Parameter preparation (done once): pad hidden/output feature dims to lane
# multiples (input dim left unpadded), cast weights to the compute dtype.
# Zero padding is exact: padded hidden units are ReLU(0)=0 and feed zero
# weight rows; padded output columns are sliced off in the wrapper.
# ---------------------------------------------------------------------------
def prepare_decoder_params(params, compute_dtype=jnp.bfloat16):
    w1, b1 = params["w1"], params["b1"]
    w2, b2 = params["w2"], params["b2"]
    w3, b3 = params["w3"], params["b3"]

    d_in, d_h1 = w1.shape
    d_h2 = w2.shape[1]
    d_out = w3.shape[1]
    p_h1, p_h2, p_out = (_round_up(d, LANE) for d in (d_h1, d_h2, d_out))

    def pad2(a, r, c):
        return jnp.pad(a, ((0, r - a.shape[0]), (0, c - a.shape[1])))

    return {
        "w1": pad2(w1, d_in, p_h1).astype(compute_dtype),   # first dim stays d_in (unpadded)
        "b1": pad2(b1, 1, p_h1).astype(jnp.float32),
        "w2": pad2(w2, p_h1, p_h2).astype(compute_dtype),
        "b2": pad2(b2, 1, p_h2).astype(jnp.float32),
        "w3": pad2(w3, p_h2, p_out).astype(compute_dtype),
        "b3": pad2(b3, 1, p_out).astype(jnp.float32),
        "d_in": d_in,
        "d_out": d_out,
        "compute_dtype": compute_dtype,
    }


def _choose_batch_tile(b, block_batch, compute_dtype):
    # Sub-32-bit dtypes pack along sublanes: bf16 wants multiples of 16.
    sub = 16 if compute_dtype == jnp.bfloat16 else 8
    if b <= 2 * sub:
        return b                                   # one (possibly ragged) tile: full-dim block is legal
    # Large enough to amortize per-step overhead, but keep >=2 roughly equal
    # steps so the "parallel" batch axis shards across both v7x TensorCores.
    return min(block_batch, _round_up(pl.cdiv(b, 2), sub))


# ---------------------------------------------------------------------------
# Forward wrapper.
# ---------------------------------------------------------------------------
def decoder_forward(x, prepared, *, block_batch=2048, out_dtype=None):
    w1, b1 = prepared["w1"], prepared["b1"]
    w2, b2 = prepared["w2"], prepared["b2"]
    w3, b3 = prepared["w3"], prepared["b3"]
    d_in, d_out = prepared["d_in"], prepared["d_out"]
    compute_dtype = prepared["compute_dtype"]
    p_out = w3.shape[1]

    b = x.shape[0]
    x2d = x.reshape(b, -1).astype(compute_dtype)     # x.view(x.size(0), -1)
    assert x2d.shape[1] == d_in, "flattened input does not match input_dim"

    tb = _choose_batch_tile(b, block_batch, compute_dtype)
    grid = (pl.cdiv(b, tb),)                         # ragged last tile allowed (masked stores)

    # Weights/biases: constant index map -> DMA'd once, VMEM-resident across steps.
    resident = lambda arr: pl.BlockSpec(arr.shape, lambda i: (0, 0))

    out = pl.pallas_call(
        decoder_kernel,
        out_shape=jax.ShapeDtypeStruct((b, p_out), compute_dtype),
        grid=grid,
        in_specs=[
            pl.BlockSpec((tb, d_in), lambda i: (i, 0)),   # x: pipelined over batch, unpadded features
            resident(w1), resident(b1),
            resident(w2), resident(b2),
            resident(w3), resident(b3),
        ],
        out_specs=pl.BlockSpec((tb, p_out), lambda i: (i, 0)),
        compiler_params=pltpu.CompilerParams(
            dimension_semantics=("parallel",),            # megacore sharding on v7x
        ),
    )(x2d, w1, b1, w2, b2, w3, b3)

    if p_out != d_out:
        out = out[:, :d_out]
    if out_dtype is not None and out.dtype != out_dtype:
        out = out.astype(out_dtype)
    return out


# ---------------------------------------------------------------------------
# Param init: mimics nn.Linear default (uniform +-1/sqrt(fan_in)); weights
# stored as (in, out) == PyTorch weight.T.
# ---------------------------------------------------------------------------
def init_decoder_params(key, input_dim, output_dim, hidden_dim_one, hidden_dim_two):
    dims = [(input_dim, hidden_dim_one),
            (hidden_dim_one, hidden_dim_two),
            (hidden_dim_two, output_dim)]
    params = {}
    for i, (din, dout) in enumerate(dims, start=1):
        key, kw, kb = jax.random.split(key, 3)
        bound = 1.0 / jnp.sqrt(jnp.float32(din))
        params[f"w{i}"] = jax.random.uniform(kw, (din, dout), jnp.float32, -bound, bound)
        params[f"b{i}"] = jax.random.uniform(kb, (1, dout), jnp.float32, -bound, bound)
    return params


def _reference(x, params):
    xr = x.reshape(x.shape[0], -1)
    h1 = jnp.maximum(xr @ params["w1"] + params["b1"], 0.0)
    h2 = jnp.maximum(h1 @ params["w2"] + params["b2"], 0.0)
    return jax.nn.sigmoid(h2 @ params["w3"] + params["b3"])


if __name__ == "__main__":
    # Shapes consistent with the module: latent input (2, 4, 8) -> flatten 32,
    # hidden_dim_one=64, hidden_dim_two=48, output_dim=128.
    batch = 2
    input_dim, hidden_one, hidden_two, output_dim = 32, 64, 48, 128

    key = jax.random.PRNGKey(0)
    key, kx, kxb = jax.random.split(key, 3)
    x = jax.random.normal(kx, (batch, 4, 8), jnp.float32)       # -> (2, 32)

    params = init_decoder_params(key, input_dim, output_dim, hidden_one, hidden_two)

    # --- f32 compute path (tight check; tolerance covers approx reciprocal) ---
    prep_f32 = prepare_decoder_params(params, compute_dtype=jnp.float32)
    out = jax.block_until_ready(decoder_forward(x, prep_f32))
    ref = _reference(x, params)
    assert out.shape == (batch, output_dim)
    assert out.dtype == jnp.float32
    assert jnp.allclose(out, ref, atol=5e-3, rtol=0), "f32 path mismatch"

    # --- larger non-multiple batch exercises the multi-step grid + ragged last tile ---
    x_big = jax.random.normal(kxb, (300, input_dim), jnp.float32)
    out_big = jax.block_until_ready(decoder_forward(x_big, prep_f32))
    ref_big = _reference(x_big, params)
    assert out_big.shape == (300, output_dim)
    assert jnp.allclose(out_big, ref_big, atol=5e-3, rtol=0), "tiled f32 path mismatch"

    # --- default bf16 compute + bf16 I/O path: halves HBM/VMEM traffic ---
    prep_bf16 = prepare_decoder_params(params)                   # compute_dtype defaults to bf16
    out_bf16 = jax.block_until_ready(decoder_forward(x_big, prep_bf16))
    assert out_bf16.dtype == jnp.bfloat16
    assert jnp.allclose(out_bf16.astype(jnp.float32), ref_big, atol=4e-2, rtol=0), "bf16 path mismatch"

    print("KERNEL_OK")
</pallas_src>

<mosaic_0001>
module attributes {stable_mosaic.version = 11 : i64} {
  func.func @decoder_kernel(%arg0: i32, %arg1: memref<2x32xf32, #tpu.memory_space<vmem>>, %arg2: memref<32x128xf32, #tpu.memory_space<vmem>>, %arg3: memref<1x128xf32, #tpu.memory_space<vmem>>, %arg4: memref<128x128xf32, #tpu.memory_space<vmem>>, %arg5: memref<1x128xf32, #tpu.memory_space<vmem>>, %arg6: memref<128x128xf32, #tpu.memory_space<vmem>>, %arg7: memref<1x128xf32, #tpu.memory_space<vmem>>, %arg8: memref<2x128xf32, #tpu.memory_space<vmem>>) attributes {dimension_semantics = [#tpu.dimension_semantics<parallel>], iteration_bounds = array<i64: 1>, scalar_prefetch = 0 : i64, scratch_operands = 0 : i64, tpu.core_type = #tpu.core_type<tc>, window_params = [{transform_indices = @transform_0, window_bounds = array<i64: 2, 32>}, {pipeline_mode = #tpu.pipeline_mode<synchronous>, transform_indices = @transform_1, window_bounds = array<i64: 32, 128>}, {pipeline_mode = #tpu.pipeline_mode<synchronous>, transform_indices = @transform_2, window_bounds = array<i64: 1, 128>}, {pipeline_mode = #tpu.pipeline_mode<synchronous>, transform_indices = @transform_3, window_bounds = array<i64: 128, 128>}, {pipeline_mode = #tpu.pipeline_mode<synchronous>, transform_indices = @transform_4, window_bounds = array<i64: 1, 128>}, {pipeline_mode = #tpu.pipeline_mode<synchronous>, transform_indices = @transform_5, window_bounds = array<i64: 128, 128>}, {pipeline_mode = #tpu.pipeline_mode<synchronous>, transform_indices = @transform_6, window_bounds = array<i64: 1, 128>}, {transform_indices = @transform_7, window_bounds = array<i64: 2, 128>}]} {
    %c0 = arith.constant 0 : index
    %c0_0 = arith.constant 0 : index
    %0 = vector.load %arg1[%c0, %c0_0] : memref<2x32xf32, #tpu.memory_space<vmem>>, vector<2x32xf32>
    %c0_1 = arith.constant 0 : index
    %c0_2 = arith.constant 0 : index
    %1 = vector.load %arg2[%c0_1, %c0_2] : memref<32x128xf32, #tpu.memory_space<vmem>>, vector<32x128xf32>
    %cst = arith.constant dense<0.000000e+00> : vector<2x128xf32>
    %2 = tpu.matmul %0, %1, %cst {dimension_numbers = #tpu.dot_dimension_numbers<[1], [0], [0], [1], [0, 0, 1, 1], [], []>} : vector<2x32xf32>, vector<32x128xf32>, vector<2x128xf32> -> vector<2x128xf32>
    %c0_3 = arith.constant 0 : index
    %c0_4 = arith.constant 0 : index
    %3 = vector.load %arg3[%c0_3, %c0_4] : memref<1x128xf32, #tpu.memory_space<vmem>>, vector<1x128xf32>
    %4 = vector.broadcast %3 : vector<1x128xf32> to vector<2x128xf32>
    %5 = arith.addf %2, %4 : vector<2x128xf32>
    %cst_5 = arith.constant 0.000000e+00 : f32
    %6 = vector.broadcast %cst_5 : f32 to vector<2x128xf32>
    %7 = arith.maximumf %5, %6 : vector<2x128xf32>
    %c0_6 = arith.constant 0 : index
    %c0_7 = arith.constant 0 : index
    %8 = vector.load %arg4[%c0_6, %c0_7] : memref<128x128xf32, #tpu.memory_space<vmem>>, vector<128x128xf32>
    %cst_8 = arith.constant dense<0.000000e+00> : vector<2x128xf32>
    %9 = tpu.matmul %7, %8, %cst_8 {dimension_numbers = #tpu.dot_dimension_numbers<[1], [0], [0], [1], [0, 0, 1, 1], [], []>} : vector<2x128xf32>, vector<128x128xf32>, vector<2x128xf32> -> vector<2x128xf32>
    %c0_9 = arith.constant 0 : index
    %c0_10 = arith.constant 0 : index
    %10 = vector.load %arg5[%c0_9, %c0_10] : memref<1x128xf32, #tpu.memory_space<vmem>>, vector<1x128xf32>
    %11 = vector.broadcast %10 : vector<1x128xf32> to vector<2x128xf32>
    %12 = arith.addf %9, %11 : vector<2x128xf32>
    %cst_11 = arith.constant 0.000000e+00 : f32
    %13 = vector.broadcast %cst_11 : f32 to vector<2x128xf32>
    %14 = arith.maximumf %12, %13 : vector<2x128xf32>
    %c0_12 = arith.constant 0 : index
    %c0_13 = arith.constant 0 : index
    %15 = vector.load %arg6[%c0_12, %c0_13] : memref<128x128xf32, #tpu.memory_space<vmem>>, vector<128x128xf32>
    %cst_14 = arith.constant dense<0.000000e+00> : vector<2x128xf32>
    %16 = tpu.matmul %14, %15, %cst_14 {dimension_numbers = #tpu.dot_dimension_numbers<[1], [0], [0], [1], [0, 0, 1, 1], [], []>} : vector<2x128xf32>, vector<128x128xf32>, vector<2x128xf32> -> vector<2x128xf32>
    %c0_15 = arith.constant 0 : index
    %c0_16 = arith.constant 0 : index
    %17 = vector.load %arg7[%c0_15, %c0_16] : memref<1x128xf32, #tpu.memory_space<vmem>>, vector<1x128xf32>
    %18 = vector.broadcast %17 : vector<1x128xf32> to vector<2x128xf32>
    %19 = arith.addf %16, %18 : vector<2x128xf32>
    %cst_17 = arith.constant -3.000000e+01 : f32
    %20 = vector.broadcast %cst_17 : f32 to vector<2x128xf32>
    %21 = arith.maximumf %19, %20 : vector<2x128xf32>
    %cst_18 = arith.constant 0.000000e+00 : f32
    %22 = vector.broadcast %cst_18 : f32 to vector<2x128xf32>
    %23 = arith.subf %22, %21 : vector<2x128xf32>
    %24 = math.exp %23 : vector<2x128xf32>
    %cst_19 = arith.constant 1.000000e+00 : f32
    %25 = vector.broadcast %cst_19 : f32 to vector<2x128xf32>
    %26 = arith.addf %25, %24 : vector<2x128xf32>
    %27 = tpu.reciprocal %26 {approx = true} : vector<2x128xf32> -> vector<2x128xf32>
    %c0_20 = arith.constant 0 : index
    %c0_21 = arith.constant 0 : index
    %28 = vector.load %arg8[%c0_20, %c0_21] : memref<2x128xf32, #tpu.memory_space<vmem>>, vector<2x128xf32>
    tpu.vector_store %arg8[%c0_20, %c0_21], %27 {strides = array<i32>} : memref<2x128xf32, #tpu.memory_space<vmem>>, vector<2x128xf32>,
    return
  }
  func.func @transform_0(%arg0: i32) -> (i32, i32) {
    %c0_i32 = arith.constant 0 : i32
    %c0_i32_0 = arith.constant 0 : i32
    return %arg0, %c0_i32 : i32, i32
  }
  func.func @transform_1(%arg0: i32) -> (i32, i32) {
    %c0_i32 = arith.constant 0 : i32
    %c0_i32_0 = arith.constant 0 : i32
    %c0_i32_1 = arith.constant 0 : i32
    return %c0_i32, %c0_i32_0 : i32, i32
  }
  func.func @transform_2(%arg0: i32) -> (i32, i32) {
    %c0_i32 = arith.constant 0 : i32
    %c0_i32_0 = arith.constant 0 : i32
    %c0_i32_1 = arith.constant 0 : i32
    return %c0_i32, %c0_i32_0 : i32, i32
  }
  func.func @transform_3(%arg0: i32) -> (i32, i32) {
    %c0_i32 = arith.constant 0 : i32
    %c0_i32_0 = arith.constant 0 : i32
    %c0_i32_1 = arith.constant 0 : i32
    return %c0_i32, %c0_i32_0 : i32, i32
  }
  func.func @transform_4(%arg0: i32) -> (i32, i32) {
    %c0_i32 = arith.constant 0 : i32
    %c0_i32_0 = arith.constant 0 : i32
    %c0_i32_1 = arith.constant 0 : i32
    return %c0_i32, %c0_i32_0 : i32, i32
  }
  func.func @transform_5(%arg0: i32) -> (i32, i32) {
    %c0_i32 = arith.constant 0 : i32
    %c0_i32_0 = arith.constant 0 : i32
    %c0_i32_1 = arith.constant 0 : i32
    return %c0_i32, %c0_i32_0 : i32, i32
  }
  func.func @transform_6(%arg0: i32) -> (i32, i32) {
    %c0_i32 = arith.constant 0 : i32
    %c0_i32_0 = arith.constant 0 : i32
    %c0_i32_1 = arith.constant 0 : i32
    return %c0_i32, %c0_i32_0 : i32, i32
  }
  func.func @transform_7(%arg0: i32) -> (i32, i32) {
    %c0_i32 = arith.constant 0 : i32
    %c0_i32_0 = arith.constant 0 : i32
    return %arg0, %c0_i32 : i32, i32
  }
}

</mosaic_0001>

<bundles_post_ra>
// kernel: tpu_custom_call.1
= control target key start
LH: loop header
LB: loop body
LE: loop exit
PB: predicated region body
PF: predicated region fallthrough
CT: control target
= control target key end

     0   :  { %12 = vsyncpa [#allocation3], 0  ;;  %s747_s0 = inlined_call_operand.hbm [shape: f32[2,32], index: 0, kind: input, shape index: {}]   ;;  %s748_s1 = inlined_call_operand.hbm [shape: f32[32,128], index: 1, kind: input, shape index: {}]   ;;  %s749_s2 = inlined_call_operand.vmem [shape: f32[1,128], index: 2, kind: input, shape index: {}]   ;;  %s750_s3 = inlined_call_operand.hbm [shape: f32[128,128], index: 3, kind: input, shape index: {}]   ;;  %s751_s4 = inlined_call_operand.vmem [shape: f32[1,128], index: 4, kind: input, shape index: {}]   ;;  %s752_s5 = inlined_call_operand.hbm [shape: f32[128,128], index: 5, kind: input, shape index: {}]   ;;  %s753_s6 = inlined_call_operand.vmem [shape: f32[1,128], index: 6, kind: input, shape index: {}]   ;;  %s754_s7 = inlined_call_operand.hbm [shape: f32[2,128], index: 7, kind: output, shape index: {}]  }
   0x1   :  { %13 = vsyncpa [#allocation6], 0 }
   0x2   :  { %14 = vsyncpa [#allocation9], 0 }
   0x3   :  { %15 = vsyncpa [#allocation4], 0  ;;  %s623_s24 = smov [#allocation5]  }
   0x4   :  { %s31_s25 = sshll.u32 %s623_s24, 4  ;;  %s32_s25 = int_to_ptr.vmem [resolvable:$true] %s31_s25 }
   0x5   :  { %s523_s26 = scalar_lea.vmem %s32_s25, 512  ;;  %p528_p1 = scmp.lt.s32.totalorder %s32_s25, %s32_s25 }
   0x6   :  { %p524_p0 = scmp.ne.s32.totalorder %s32_s25, %s523_s26  ;;  %p529_p2 = scmp.lt.s32.totalorder %s523_s26, %s523_s26 }
   0x8   :  { %p530_p3 = por %p529_p2, %p528_p1 }
   0xa   :  { %p531_p4 = pnand %p530_p3, %p524_p0 }
   0xc   :  { %534 = shalt.err (!%p531_p4)
}
   0xd   :  { %s624_s27 = smov 128   ;;  %s625_s28 = smov 8  }
   0xe   :  { %37 = dma.hbm_to_vmem [thread:$0]  %s748_s1, 512, %s32_s25, [#allocation6], %s624_s27, %s624_s27, %s625_s28  }
   0xf   :  { %s626_s8 = smov [#allocation2]   ;;  %s627_s10 = smov [#allocation7]  }
  0x10   :  { %s22_s9 = sshll.u32 %s626_s8, 4  ;;  %s45_s11 = sshll.u32 %s627_s10, 4  ;;  %s23_s9 = int_to_ptr.vmem [resolvable:$true] %s22_s9  ;;  %s46_s11 = int_to_ptr.vmem [resolvable:$true] %s45_s11 }
  0x11   :  { %s543_s12 = scalar_lea.vmem %s23_s9, 32  ;;  %p548_p6 = scmp.lt.s32.totalorder %s23_s9, %s23_s9 }
  0x12   :  { %p544_p5 = scmp.ne.s32.totalorder %s23_s9, %s543_s12  ;;  %p549_p7 = scmp.lt.s32.totalorder %s543_s12, %s543_s12 }
  0x14   :  { %p550_p8 = por %p549_p7, %p548_p6 }
  0x16   :  { %p551_p9 = pnand %p550_p8, %p544_p5 }
  0x18   :  { %554 = shalt.err (!%p551_p9)
}
  0x19   :  { %25 = dma.hbm_to_vmem [thread:$0]  %s747_s0, 32, %s23_s9, [#allocation3]  }
  0x1a   :  { %s563_s15 = scalar_lea.vmem %s46_s11, 2048  ;;  %p568_p11 = scmp.lt.s32.totalorder %s46_s11, %s46_s11 }
  0x1b   :  { %p564_p10 = scmp.ne.s32.totalorder %s46_s11, %s563_s15  ;;  %p569_p12 = scmp.lt.s32.totalorder %s563_s15, %s563_s15 }
  0x1d   :  { %p570_p13 = por %p569_p12, %p568_p11 }
  0x1f   :  { %p571_p0 = pnand %p570_p13, %p564_p10 }
  0x21   :  { %574 = shalt.err (!%p571_p0)
}
  0x22   :  { %51 = dma.hbm_to_vmem [thread:$0]  %s750_s3, 2048, %s46_s11, [#allocation6], %s624_s27, %s624_s27, %s625_s28  }
  0x23   :  { %s628_s17 = smov [#allocation8]  }
  0x24   :  { %s59_s18 = sshll.u32 %s628_s17, 4  ;;  %s60_s18 = int_to_ptr.vmem [resolvable:$true] %s59_s18 }
  0x25   :  { %s583_s19 = scalar_lea.vmem %s60_s18, 2048  ;;  %p588_p2 = scmp.lt.s32.totalorder %s60_s18, %s60_s18 }
  0x26   :  { %p584_p1 = scmp.ne.s32.totalorder %s60_s18, %s583_s19  ;;  %p589_p3 = scmp.lt.s32.totalorder %s583_s19, %s583_s19 }
  0x28   :  { %p590_p4 = por %p589_p3, %p588_p2 }
  0x2a   :  { %p591_p5 = pnand %p590_p4, %p584_p1 }
  0x2c   :  { %594 = shalt.err (!%p591_p5)
}
  0x2d   :  { %65 = dma.hbm_to_vmem [thread:$0]  %s752_s5, 2048, %s60_s18, [#allocation9], %s624_s27, %s624_s27, %s625_s28  }
  0x2e   :  { %615 = dma.done.wait [#allocation3], 32  }
  0x2f   :  { %616 = vsyncadd [#allocation3], 4294967264 }
  0x30   :  { %617 = dma.done.wait [#allocation6], 2560  }
  0x31   :  { %618 = vsyncadd [#allocation6], 4294964736 }
  0x32   :  { %619 = dma.done.wait [#allocation9], 2048  }
  0x33   :  { %620 = vsyncadd [#allocation9], 4294965248  ;;  %v629_v0 = vmov 0.0   ;;  %vm630_vm0 = vmmov 0   ;;  %v84_v1 = vld [vmem:[#allocation5 + $0x18] sm:$0xff]  ;;  %v83_v2 = vld [vmem:[#allocation5 + $0x10] sm:$0xff] }
  0x34   :  { %421 = vmatprep.subr.mxu0 %v629_v0  ;;  %429 = vmatprep.mubr.msk.f32.mxu0 %vm630_vm0, %v629_v0  ;;  %v182_v3 = vld [vmem:[#allocation7 + $0x78] sm:$0xff]  ;;  %v82_v4 = vld [vmem:[#allocation5 + $0x8] sm:$0xff]  ;;  %v181_v5 = vld [vmem:[#allocation7 + $0x70] sm:$0xff]  ;;  %vm92_vm1 = vcmask 261120  }
  0x35   :  { %432 = vmatprep.subr.mxu1 %v629_v0  ;;  %464 = vmatprep.mubr.msk.f32.mxu1 %vm630_vm0, %v629_v0  ;;  %v180_v6 = vld [vmem:[#allocation7 + $0x68] sm:$0xff]  ;;  %v81_v7 = vld [vmem:[#allocation5] sm:$0xff]  ;;  %v80_v8 = vld [vmem:[#allocation2] sm:$0x3] }
  0x36   :  { %422 = vmatpush3.msra.mxu0 %v84_v1  ;;  %433 = vmatpush3.msra.mxu1 %v182_v3  ;;  %v179_v9 = vld [vmem:[#allocation7 + $0x60] sm:$0xff]  ;;  %v178_v10 = vld [vmem:[#allocation7 + $0x58] sm:$0xff]  ;;  %v177_v11 = vld [vmem:[#allocation7 + $0x50] sm:$0xff] }
  0x37   :  { %423 = vmatprep.subr.mxu0 %v629_v0  ;;  %434 = vmatprep.subr.mxu1 %v629_v0  ;;  %v176_v12 = vld [vmem:[#allocation7 + $0x48] sm:$0xff]  ;;  %v175_v13 = vld [vmem:[#allocation7 + $0x40] sm:$0xff]  ;;  %v174_v14 = vld [vmem:[#allocation7 + $0x38] sm:$0xff] }
  0x38   :  { %424 = vmatpush3.msra.mxu0 %v83_v2  ;;  %435 = vmatpush3.msra.mxu1 %v181_v5  ;;  %v173_v15 = vld [vmem:[#allocation7 + $0x30] sm:$0xff]  ;;  %v172_v16 = vld [vmem:[#allocation7 + $0x28] sm:$0xff]  ;;  %v171_v17 = vld [vmem:[#allocation7 + $0x20] sm:$0xff] }
  0x39   :  { %425 = vmatprep.subr.mxu0 %v629_v0  ;;  %436 = vmatprep.subr.mxu1 %v629_v0  ;;  %v170_v18 = vld [vmem:[#allocation7 + $0x18] sm:$0xff]  ;;  %v169_v19 = vld [vmem:[#allocation7 + $0x10] sm:$0xff]  ;;  %v168_v20 = vld [vmem:[#allocation7 + $0x8] sm:$0xff] }
  0x3a   :  { %426 = vmatpush3.msra.mxu0 %v82_v4  ;;  %437 = vmatpush3.msra.mxu1 %v180_v6  ;;  %v167_v21 = vld [vmem:[#allocation7] sm:$0xff]  ;;  %v276_v22 = vld [vmem:[#allocation8 + $0x78] sm:$0xff]  ;;  %v275_v23 = vld [vmem:[#allocation8 + $0x70] sm:$0xff] }
  0x3b   :  { %427 = vmatprep.subr.mxu0 %v629_v0  ;;  %438 = vmatprep.subr.mxu1 %v629_v0  ;;  %v274_v24 = vld [vmem:[#allocation8 + $0x68] sm:$0xff]  ;;  %v273_v25 = vld [vmem:[#allocation8 + $0x60] sm:$0xff]  ;;  %v272_v26 = vld [vmem:[#allocation8 + $0x58] sm:$0xff] }
  0x3c   :  { %428 = vmatpush3.msra.mxu0 %v81_v7  ;;  %439 = vmatpush3.msra.mxu1 %v179_v9  ;;  %v271_v27 = vld [vmem:[#allocation8 + $0x50] sm:$0xff]  ;;  %v270_v28 = vld [vmem:[#allocation8 + $0x48] sm:$0xff]  ;;  %v269_v29 = vld [vmem:[#allocation8 + $0x40] sm:$0xff] }
  0x3d   :  { %430 = vmatmul.mubr.msk.f32.vlgmr.msra.gmra.mxu0 %vm92_vm1, %v80_v8  ;;  %440 = vmatprep.subr.mxu1 %v629_v0  ;;  %v268_v30 = vld [vmem:[#allocation8 + $0x38] sm:$0xff]  ;;  %v267_v31 = vld [vmem:[#allocation8 + $0x30] sm:$0xff]  ;;  %v266_v32 = vld [vmem:[#allocation8 + $0x28] sm:$0xff] }
  0x3e   :  { %467 = vmatprep.subr.mxu0 %v629_v0  ;;  %441 = vmatpush3.msra.mxu1 %v178_v10  ;;  %v265_v33 = vld [vmem:[#allocation8 + $0x20] sm:$0xff]  ;;  %v264_v34 = vld [vmem:[#allocation8 + $0x18] sm:$0xff]  ;;  %v263_v40 = vld [vmem:[#allocation8 + $0x10] sm:$0xff] }
  0x3f   :  { %499 = vmatprep.mubr.msk.f32.mxu0 %vm630_vm0, %v629_v0  ;;  %442 = vmatprep.subr.mxu1 %v629_v0  ;;  %v378_v35 = vld [vmem:[%s749_s2] ss:$0 sm:$0xff]  ;;  %v262_v41 = vld [vmem:[#allocation8 + $0x8] sm:$0xff]  ;;  %v261_v42 = vld [vmem:[#allocation8] sm:$0xff] }
  0x40   :  { %443 = vmatpush3.msra.mxu1 %v177_v11  ;;  %468 = vmatpush3.msra.mxu0 %v276_v22  ;;  %v380_v43 = vld [vmem:[%s751_s4] ss:$0 sm:$0xff]  ;;  %s631_s4 = smov [#allocation10]  }
  0x41   :  { %444 = vmatprep.subr.mxu1 %v629_v0  ;;  %469 = vmatprep.subr.mxu0 %v629_v0  ;;  %v381_v48 = vld [vmem:[%s753_s6] ss:$0 sm:$0xff]  ;;  %s367_s24 = sshll.u32 %s631_s4, 4  ;;  %s368_s24 = int_to_ptr.vmem [resolvable:$true] %s367_s24 }
  0x42   :  { %445 = vmatpush3.msra.mxu1 %v176_v12  ;;  %470 = vmatpush3.msra.mxu0 %v275_v23  ;;  %s595_s25 = scalar_lea.vmem %s368_s24, 32  ;;  %p600_p7 = scmp.lt.s32.totalorder %s368_s24, %s368_s24 }
  0x43   :  { %446 = vmatprep.subr.mxu1 %v629_v0  ;;  %471 = vmatprep.subr.mxu0 %v629_v0  ;;  %p596_p6 = scmp.ne.s32.totalorder %s368_s24, %s595_s25  ;;  %p601_p8 = scmp.lt.s32.totalorder %s595_s25, %s595_s25 }
  0x44   :  { %447 = vmatpush3.msra.mxu1 %v175_v13  ;;  %472 = vmatpush3.msra.mxu0 %v274_v24 }
  0x45   :  { %448 = vmatprep.subr.mxu1 %v629_v0  ;;  %473 = vmatprep.subr.mxu0 %v629_v0  ;;  %p602_p9 = por %p601_p8, %p600_p7 }
  0x46   :  { %449 = vmatpush3.msra.mxu1 %v174_v14  ;;  %474 = vmatpush3.msra.mxu0 %v273_v25 }
  0x47   :  { %450 = vmatprep.subr.mxu1 %v629_v0  ;;  %475 = vmatprep.subr.mxu0 %v629_v0  ;;  %p603_p10 = pnand %p602_p9, %p596_p6 }
  0x48   :  { %451 = vmatpush3.msra.mxu1 %v173_v15  ;;  %476 = vmatpush3.msra.mxu0 %v272_v26 }
  0x49   :  { %452 = vmatprep.subr.mxu1 %v629_v0  ;;  %477 = vmatprep.subr.mxu0 %v629_v0 }
  0x4a   :  { %453 = vmatpush3.msra.mxu1 %v172_v16  ;;  %478 = vmatpush3.msra.mxu0 %v271_v27 }
  0x4b   :  { %454 = vmatprep.subr.mxu1 %v629_v0  ;;  %479 = vmatprep.subr.mxu0 %v629_v0 }
  0x4c   :  { %455 = vmatpush3.msra.mxu1 %v171_v17  ;;  %480 = vmatpush3.msra.mxu0 %v270_v28 }
  0x4d   :  { %456 = vmatprep.subr.mxu1 %v629_v0  ;;  %481 = vmatprep.subr.mxu0 %v629_v0 }
  0x4e   :  { %457 = vmatpush3.msra.mxu1 %v170_v18  ;;  %482 = vmatpush3.msra.mxu0 %v269_v29 }
  0x4f   :  { %458 = vmatprep.subr.mxu1 %v629_v0  ;;  %483 = vmatprep.subr.mxu0 %v629_v0 }
  0x50   :  { %459 = vmatpush3.msra.mxu1 %v169_v19  ;;  %484 = vmatpush3.msra.mxu0 %v268_v30 }
  0x51   :  { %460 = vmatprep.subr.mxu1 %v629_v0  ;;  %485 = vmatprep.subr.mxu0 %v629_v0 }
  0x52   :  { %461 = vmatpush3.msra.mxu1 %v168_v20  ;;  %486 = vmatpush3.msra.mxu0 %v267_v31 }
  0x53   :  { %462 = vmatprep.subr.mxu1 %v629_v0  ;;  %487 = vmatprep.subr.mxu0 %v629_v0 }
  0x54   :  { %463 = vmatpush3.msra.mxu1 %v167_v21  ;;  %488 = vmatpush3.msra.mxu0 %v266_v32 }
  0x55   :  { %489 = vmatprep.subr.mxu0 %v629_v0 }
  0x56   :  { %490 = vmatpush3.msra.mxu0 %v265_v33 }
  0x57   :  { %491 = vmatprep.subr.mxu0 %v629_v0 }
  0x58   :  { %492 = vmatpush3.msra.mxu0 %v264_v34 }
  0x59   :  { %493 = vmatprep.subr.mxu0 %v629_v0 }
  0x5a   :  { %494 = vmatpush3.msra.mxu0 %v263_v40 }
  0x5b   :  { %495 = vmatprep.subr.mxu0 %v629_v0 }
  0x5c   :  { %496 = vmatpush3.msra.mxu0 %v262_v41 }
  0x5d   :  { %497 = vmatprep.subr.mxu0 %v629_v0 }
  0x5e   :  { %498 = vmatpush3.msra.mxu0 %v261_v42 }
  0xfd   :  { %v162_v36 = vpop.f32.mrf.mxu0 }
  0xfe   :  { %v163_v37 = vadd.f32 %v378_v35, %v162_v36 }
  0xff   :  { %v431_v38 = vpop.f32.mrf.mxu0 }
 0x100   :  { %v166_v39 = vmax.f32 %v163_v37, 0.0 }
 0x102   :  { %465 = vmatmul.mubr.f32.vlgmr.msra.gmra.mxu1 %v166_v39 }
 0x1c2   :  { %v256_v44 = vpop.f32.mrf.mxu1 }
 0x1c3   :  { %v257_v45 = vadd.f32 %v380_v43, %v256_v44 }
 0x1c4   :  { %v466_v46 = vpop.f32.mrf.mxu1 }
 0x1c5   :  { %v260_v47 = vmax.f32 %v257_v45, 0.0 }
 0x1c7   :  { %500 = vmatmul.mubr.f32.vlgmr.msra.gmra.mxu0 %v260_v47 }
 0x287   :  { %v350_v49 = vpop.f32.mrf.mxu0 }
 0x288   :  { %v351_v50 = vadd.f32 %v381_v48, %v350_v49 }
 0x289   :  { %v501_v51 = vpop.f32.mrf.mxu0 }
 0x28a   :  { %v354_v52 = vmax.f32 %v351_v50, -30.0 }
 0x28c   :  { %v355_v53 = vsub.f32 0.0, %v354_v52 }
 0x28e   :  { %v356_v54 = vmul.f32 1.442695, %v355_v53 }
 0x290   :  { %511 = vpow2.f32 %v356_v54 }
 0x29d   :  { %v512_v55 = vpop.eup %511 }
 0x29e   :  { %v358_v56 = vadd.f32 1.0, %v512_v55 }
 0x2a0   :  { %513 = vrcp.f32 %v358_v56 }
 0x2ad   :  { %v514_v57 = vpop.eup %513 }
 0x2ae   :  { %360 = vst [vmem:[#allocation10] sm:$0x3] %v514_v57 }
 0x2af   :  { %606 = shalt.err (!%p603_p10)
}
 0x2b0   :  { %370 = dma.vmem_to_hbm [thread:$0]  %s368_s24, 32, %s754_s7, [#allocation4]  }
 0x2b1   :  { %621 = dma.done.wait [#allocation4], 32  }
 0x2b2   :  { %622 = vsyncadd [#allocation4], 4294967264 }
 0x2b3   :  { %374 = vsyncpa [#allocation3], 1 }
 0x2b4   :  { %375 = vsyncpa [#allocation6], 1 }
 0x2b5   :  { %376 = vsyncpa [#allocation9], 1 }
 0x2b6   :  { %377 = vsyncpa [#allocation4], 1 }

</bundles_post_ra>
